<compile_context>
chip_gen: v7x
topology: tpu7x:2x2x1
jax: 0.10.0
libtpu: 0.0.40
codegen_flags: <defaults>
</compile_context>

<pallas_src>
import functools

import numpy as np
import jax
import jax.numpy as jnp
from jax.experimental import pallas as pl
from jax.experimental.pallas import tpu as pltpu


_VMEM_LIMIT = 32 * 1024 * 1024  # scoped-VMEM budget that is safe on v5e/v6e/v7x
_SMEM_SPEC = pl.BlockSpec(memory_space=pltpu.MemorySpace.SMEM)


def _round_up(x, m):
    return (x + m - 1) // m * m


def _pick_batch_tile(n, cap=128):
    """Largest 8-multiple tile (<= cap) dividing n, else the full batch."""
    for cand in (cap, 64, 32, 16, 8):
        if cand <= n and n % cand == 0:
            return cand
    return n


def _pick_hw_tile(hw, cap=512):
    """Spatial tile: lane-dense multiple of 128 dividing hw, else the full hw."""
    if hw % 128 != 0:
        return hw
    for cand in (cap, 384, 256, 128):
        if cand <= hw and hw % cand == 0:
            return cand
    return hw


# ---------------------------------------------------------------------------
# Pallas kernels
# ---------------------------------------------------------------------------
def _gap_kernel(x_ref, o_ref):
    """Spatial SUM (1/HW is folded into w1 downstream).

    x_ref: (bn, C, hw_tile) f32; o_ref: (bn, C) f32, accumulated over the
    hw grid axis (output block index is constant along it -> resident).
    """
    @pl.when(pl.program_id(1) == 0)
    def _():
        o_ref[...] = jnp.zeros_like(o_ref)

    o_ref[...] += jnp.sum(x_ref[...], axis=-1)


def _head_mix_kernel(lam_ref, pa_ref, pb_ref, w1_ref, b1_ref, w2_ref, b2_ref, o_ref):
    """Mixup blend on pooled features + fc1/ReLU + fc2 (LWS folded into w2/b2).

    pa/pb: (bn, C_pad) pooled spatial sums (self / batch-permuted rows),
    lam: (1,1) f32 in SMEM.  1/HW is pre-folded into w1, LWS into w2/b2.
    """
    lam = lam_ref[0, 0]
    mixed = lam * pa_ref[...] + (1.0 - lam) * pb_ref[...]
    h = jnp.dot(mixed, w1_ref[...], preferred_element_type=jnp.float32) + b1_ref[...]
    h = jnp.maximum(h, 0.0)
    o_ref[...] = jnp.dot(h, w2_ref[...], preferred_element_type=jnp.float32) + b2_ref[...]


def _head_kernel(p_ref, w1_ref, b1_ref, w2_ref, b2_ref, o_ref):
    """Eval / no-mixup head: fc1/ReLU + fc2 (no LWS, no lam, no ones tensor)."""
    h = jnp.dot(p_ref[...], w1_ref[...], preferred_element_type=jnp.float32) + b1_ref[...]
    h = jnp.maximum(h, 0.0)
    o_ref[...] = jnp.dot(h, w2_ref[...], preferred_element_type=jnp.float32) + b2_ref[...]


def _mixup_las_loss_kernel(lam_ref, logits_ref, ya_ref, yb_ref, smooth_ref,
                           loss_ref, acc_ref, *, k_real, n_real):
    """Mixup Label-Aware-Smoothing loss (CE == all-zero smoothing table).

    Single pass per (bn, K_pad) tile: one masked log-softmax, a combined
    lam-weighted one-hot gather for (y_a, y_b), scalar accumulation in SMEM.
    """
    i = pl.program_id(0)

    @pl.when(i == 0)
    def _():
        acc_ref[0] = 0.0

    logits = logits_ref[...].astype(jnp.float32)                 # (bn, Kp)
    bn, kp = logits.shape
    cls_ids = jax.lax.broadcasted_iota(jnp.int32, (bn, kp), 1)
    valid = cls_ids < k_real                                     # mask padded classes

    z = jnp.where(valid, logits, jnp.float32(-1e30))
    m = jnp.max(z, axis=-1, keepdims=True)
    zs = z - m
    p = jnp.where(valid, jnp.exp(zs), 0.0)
    lse = jnp.log(jnp.sum(p, axis=-1, keepdims=True))
    logprobs = zs - lse                                          # exact on real classes
    # mean over the *real* K classes only
    smooth_loss = -jnp.sum(jnp.where(valid, logprobs, 0.0), axis=-1,
                           keepdims=True) * (1.0 / k_real)

    lam = lam_ref[0, 0]
    smooth_tab = smooth_ref[...]                                 # (1, Kp), zero padded
    oh_a = (cls_ids == ya_ref[...]).astype(jnp.float32)          # (bn, Kp)
    oh_b = (cls_ids == yb_ref[...]).astype(jnp.float32)
    s_a = jnp.sum(smooth_tab * oh_a, axis=-1, keepdims=True)     # smoothing[y_a]
    s_b = jnp.sum(smooth_tab * oh_b, axis=-1, keepdims=True)     # smoothing[y_b]

    # lam*per_a + (1-lam)*per_b fused into one masked sum over the tile:
    w = lam * (1.0 - s_a) * oh_a + (1.0 - lam) * (1.0 - s_b) * oh_b
    mix_s = lam * s_a + (1.0 - lam) * s_b
    per = -jnp.sum(logprobs * w, axis=-1, keepdims=True) + mix_s * smooth_loss
    acc_ref[0] += jnp.sum(per)

    @pl.when(i == pl.num_programs(0) - 1)
    def _():
        loss_ref[0, 0] = acc_ref[0] * (1.0 / n_real)


# ---------------------------------------------------------------------------
# pallas_call wrappers
# ---------------------------------------------------------------------------
def global_avg_pool_sum_pallas(x_nchw):
    """Spatial sums (N, C) of an NCHW tensor; batch-parallel, HW-streamed grid."""
    n, c, h, w = x_nchw.shape
    hw = h * w
    x3 = x_nchw.reshape(n, c, hw).astype(jnp.float32)
    bn = _pick_batch_tile(n)
    hw_t = _pick_hw_tile(hw)
    return pl.pallas_call(
        _gap_kernel,
        out_shape=jax.ShapeDtypeStruct((n, c), jnp.float32),
        grid=(n // bn, hw // hw_t),
        in_specs=[pl.BlockSpec((bn, c, hw_t), lambda i, j: (i, 0, j))],
        out_specs=pl.BlockSpec((bn, c), lambda i, j: (i, 0)),
        compiler_params=pltpu.CompilerParams(
            dimension_semantics=("parallel", "arbitrary"),
            vmem_limit_bytes=_VMEM_LIMIT),
    )(x3)


def head_forward_pallas(pooled, w1, b1, w2, b2, *, pooled_perm=None, lam=None):
    """fc1+ReLU+fc2 head on pooled features; optional fused mixup blend."""
    n, cp = pooled.shape
    kp = w2.shape[1]
    bn = _pick_batch_tile(n)
    grid = (n // bn,)
    row_spec = pl.BlockSpec((bn, cp), lambda i: (i, 0))
    out_spec = pl.BlockSpec((bn, kp), lambda i: (i, 0))

    def full(shape):
        return pl.BlockSpec(shape, lambda i: (0, 0))

    params = pltpu.CompilerParams(dimension_semantics=("parallel",),
                                  vmem_limit_bytes=_VMEM_LIMIT)
    if pooled_perm is None:
        return pl.pallas_call(
            _head_kernel,
            out_shape=jax.ShapeDtypeStruct((n, kp), jnp.float32),
            grid=grid,
            in_specs=[row_spec, full(w1.shape), full(b1.shape),
                      full(w2.shape), full(b2.shape)],
            out_specs=out_spec,
            compiler_params=params,
        )(pooled, w1, b1, w2, b2)

    lam_arr = jnp.asarray(lam, jnp.float32).reshape(1, 1)
    return pl.pallas_call(
        _head_mix_kernel,
        out_shape=jax.ShapeDtypeStruct((n, kp), jnp.float32),
        grid=grid,
        in_specs=[_SMEM_SPEC, row_spec, row_spec,
                  full(w1.shape), full(b1.shape), full(w2.shape), full(b2.shape)],
        out_specs=out_spec,
        compiler_params=params,
    )(lam_arr, pooled, pooled_perm, w1, b1, w2, b2)


def mixup_las_loss_pallas(logits_pad, y_a, y_b, lam, smooth_pad, *, k_real):
    """lam * LAS(logits, y_a) + (1-lam) * LAS(logits, y_b); batch-gridded."""
    n, kp = logits_pad.shape
    bn = _pick_batch_tile(n)
    lam_arr = jnp.asarray(lam, jnp.float32).reshape(1, 1)
    ya = y_a.astype(jnp.int32).reshape(n, 1)
    yb = y_b.astype(jnp.int32).reshape(n, 1)
    kernel = functools.partial(_mixup_las_loss_kernel, k_real=k_real, n_real=n)
    loss = pl.pallas_call(
        kernel,
        out_shape=jax.ShapeDtypeStruct((1, 1), jnp.float32),
        grid=(n // bn,),
        in_specs=[
            _SMEM_SPEC,                                       # lam
            pl.BlockSpec((bn, kp), lambda i: (i, 0)),         # logits tile
            pl.BlockSpec((bn, 1), lambda i: (i, 0)),          # y_a tile
            pl.BlockSpec((bn, 1), lambda i: (i, 0)),          # y_b tile
            pl.BlockSpec((1, kp), lambda i: (0, 0)),          # smoothing table
        ],
        out_specs=pl.BlockSpec((1, 1), lambda i: (0, 0),
                               memory_space=pltpu.MemorySpace.SMEM),
        scratch_shapes=[pltpu.SMEM((1,), jnp.float32)],
        compiler_params=pltpu.CompilerParams(
            dimension_semantics=("arbitrary",),
            vmem_limit_bytes=_VMEM_LIMIT),
    )(lam_arr, logits_pad, ya, yb, smooth_pad)
    return loss[0, 0]


# ---------------------------------------------------------------------------
# MiSLAS module (JAX/Pallas port)
# ---------------------------------------------------------------------------
class MiSLASPallas:
    def __init__(self, num_classes, cls_num_list, in_channels, hidden, seed=0):
        key = jax.random.PRNGKey(seed)
        k1, k2 = jax.random.split(key, 2)
        self.num_classes = num_classes
        self.c = in_channels
        self.hidden = hidden
        # lane / MXU friendly padded dims (zero padding is an exact no-op)
        self.c_pad = _round_up(in_channels, 128)
        self.h_pad = _round_up(hidden, 128)
        self.k_pad = _round_up(num_classes, 128)

        w1 = jax.random.normal(k1, (in_channels, hidden), jnp.float32) * 0.1
        w2 = jax.random.normal(k2, (hidden, num_classes), jnp.float32) * 0.1
        self.w1 = jnp.zeros((self.c_pad, self.h_pad), jnp.float32
                            ).at[:in_channels, :hidden].set(w1)
        self.b1 = jnp.zeros((1, self.h_pad), jnp.float32)
        self.w2 = jnp.zeros((self.h_pad, self.k_pad), jnp.float32
                            ).at[:hidden, :num_classes].set(w2)
        self.b2 = jnp.zeros((1, self.k_pad), jnp.float32)

        # LearnableWeightScaling: learned_norm initialised to ones(1, num_classes);
        # folded into w2/b2 once here (would be re-folded per step if trained).
        self.lws = jnp.ones((1, num_classes), jnp.float32)
        lws_pad = jnp.zeros((1, self.k_pad), jnp.float32
                            ).at[:, :num_classes].set(self.lws)
        self.w2_lws = self.w2 * lws_pad
        self.b2_lws = self.b2 * lws_pad

        # LabelAwareSmoothing table: shape='concave', head=0.2, tail=0.0
        cls = np.array(cls_num_list, dtype=np.float64)
        n_1, n_k = cls.max(), cls.min()
        smooth = 0.0 + (0.2 - 0.0) * np.sin((cls - n_k) * np.pi / (2.0 * (n_1 - n_k)))
        sm = np.zeros((1, self.k_pad), np.float32)
        sm[0, :num_classes] = smooth.astype(np.float32)
        self.smooth = jnp.asarray(sm)
        # plain CrossEntropyLoss == label-aware smoothing with an all-zero table
        self.zero_smooth = jnp.zeros_like(self.smooth)

        self.training = True
        self._train_fwd = jax.jit(self._train_forward)
        self._eval_fwd = jax.jit(self._eval_forward)

    # -- jitted implementations ------------------------------------------------
    def _train_forward(self, x, y, key, smooth_tab, w2_eff, b2_eff):
        n, c, h, w = x.shape
        # deterministic replacement for np.random.beta / torch.randperm
        k_lam, k_perm = jax.random.split(key)
        lam = jax.random.beta(k_lam, 1.0, 1.0, dtype=jnp.float32)
        index = jax.random.permutation(k_perm, n)

        # backbone GAP streamed once over x; mixup fused on pooled features
        # (GAP is linear, so this equals pooling the mixed image).
        pooled = global_avg_pool_sum_pallas(x)                       # (N, C) spatial sums
        pooled = jnp.pad(pooled, ((0, 0), (0, self.c_pad - self.c)))  # lane-dense pad
        pooled_perm = jnp.take(pooled, index, axis=0)                 # tiny (N, C_pad) gather

        w1_eff = self.w1 * (1.0 / (h * w))                            # fold GAP mean scale
        logits_pad = head_forward_pallas(pooled, w1_eff, self.b1, w2_eff, b2_eff,
                                         pooled_perm=pooled_perm, lam=lam)

        y_b = jnp.take(y, index, axis=0)
        loss = mixup_las_loss_pallas(logits_pad, y, y_b, lam, smooth_tab,
                                     k_real=self.num_classes)
        return logits_pad[:, :self.num_classes], loss

    def _eval_forward(self, x):
        n, c, h, w = x.shape
        pooled = global_avg_pool_sum_pallas(x)
        pooled = jnp.pad(pooled, ((0, 0), (0, self.c_pad - self.c)))
        w1_eff = self.w1 * (1.0 / (h * w))
        logits_pad = head_forward_pallas(pooled, w1_eff, self.b1, self.w2, self.b2)
        return logits_pad[:, :self.num_classes]

    # -- public forward ----------------------------------------------------------
    def forward(self, x, y, stage=None, mixup_key=None):
        if self.training:
            assert stage is not None, "This is a two-stage method!"
            if stage == 1:
                # _forward_impl (no LWS) + plain CE mixup loss (zero smoothing table)
                return self._train_fwd(x, y, mixup_key, self.zero_smooth,
                                       self.w2, self.b2)
            elif stage == 2:
                # TODO(synk): .detach() on the backbone features is a grad-only op;
                # forward semantics are unchanged, so nothing to do in this port.
                return self._train_fwd(x, y, mixup_key, self.smooth,
                                       self.w2_lws, self.b2_lws)
        else:
            return self._eval_fwd(x)  # _forward_impl


# ---------------------------------------------------------------------------
# Pure-JAX reference (for correctness checking of the Pallas path)
# ---------------------------------------------------------------------------
def _ref_classifier(x, lam, index, w1, b1, w2, b2, lws):
    n, c, h, w = x.shape
    mixed = lam * x + (1.0 - lam) * x[index]
    pooled = mixed.reshape(n, c, h * w).mean(-1)
    hid = jnp.maximum(pooled @ w1 + b1, 0.0)
    return (hid @ w2 + b2) * lws


def _ref_las_loss(logits, target, smooth_vec):
    logprobs = jax.nn.log_softmax(logits, axis=-1)
    nll = -jnp.take_along_axis(logprobs, target[:, None], axis=-1)[:, 0]
    smooth_loss = -logprobs.mean(axis=-1)
    s = smooth_vec[target]
    return ((1.0 - s) * nll + s * smooth_loss).mean()


# ---------------------------------------------------------------------------
if __name__ == "__main__":
    N, C, H, W = 8, 4, 16, 16
    NUM_CLASSES = 10
    HIDDEN = 32
    cls_num_list = [500, 320, 200, 130, 80, 50, 32, 20, 12, 8]

    key = jax.random.PRNGKey(0)
    kx, ky, kmix = jax.random.split(key, 3)
    x = jax.random.normal(kx, (N, C, H, W), jnp.float32)
    y = jax.random.randint(ky, (N,), 0, NUM_CLASSES, dtype=jnp.int32)

    model = MiSLASPallas(NUM_CLASSES, cls_num_list, C, HIDDEN, seed=0)

    # stage 2 training forward (LWS head + label-aware-smoothing mixup loss)
    logits2, loss2 = model.forward(x, y, stage=2, mixup_key=kmix)
    # stage 1 training forward (plain CE mixup loss, no LWS)
    logits1, loss1 = model.forward(x, y, stage=1, mixup_key=kmix)
    # eval forward (logits only)
    model.training = False
    eval_logits = model.forward(x, None)
    jax.block_until_ready((logits2, loss2, logits1, loss1, eval_logits))

    # ---- pure-JAX reference check (same lam / perm regenerated from the key) ----
    k_lam, k_perm = jax.random.split(kmix)
    lam = jax.random.beta(k_lam, 1.0, 1.0, dtype=jnp.float32)
    index = jax.random.permutation(k_perm, N)
    w1_u = model.w1[:C, :HIDDEN]
    b1_u = model.b1[:, :HIDDEN]
    w2_u = model.w2[:HIDDEN, :NUM_CLASSES]
    b2_u = model.b2[:, :NUM_CLASSES]
    smooth_vec = model.smooth[0, :NUM_CLASSES]
    zero_vec = jnp.zeros((NUM_CLASSES,), jnp.float32)
    ones_lws = jnp.ones((1, NUM_CLASSES), jnp.float32)

    ref_l2 = _ref_classifier(x, lam, index, w1_u, b1_u, w2_u, b2_u, model.lws)
    ref_loss2 = (lam * _ref_las_loss(ref_l2, y, smooth_vec)
                 + (1.0 - lam) * _ref_las_loss(ref_l2, y[index], smooth_vec))
    ref_l1 = _ref_classifier(x, lam, index, w1_u, b1_u, w2_u, b2_u, ones_lws)
    ref_loss1 = (lam * _ref_las_loss(ref_l1, y, zero_vec)
                 + (1.0 - lam) * _ref_las_loss(ref_l1, y[index], zero_vec))
    ref_eval = _ref_classifier(x, jnp.float32(1.0), jnp.arange(N),
                               w1_u, b1_u, w2_u, b2_u, ones_lws)

    np.testing.assert_allclose(np.asarray(logits2), np.asarray(ref_l2), rtol=2e-2, atol=1e-3)
    np.testing.assert_allclose(float(loss2), float(ref_loss2), rtol=1e-2, atol=1e-3)
    np.testing.assert_allclose(np.asarray(logits1), np.asarray(ref_l1), rtol=2e-2, atol=1e-3)
    np.testing.assert_allclose(float(loss1), float(ref_loss1), rtol=1e-2, atol=1e-3)
    np.testing.assert_allclose(np.asarray(eval_logits), np.asarray(ref_eval), rtol=2e-2, atol=1e-3)

    print("KERNEL_OK")
</pallas_src>

<mosaic_0001>
module attributes {stable_mosaic.version = 11 : i64} {
  func.func @_gap_kernel(%arg0: i32, %arg1: i32, %arg2: memref<8x4x256xf32, #tpu.memory_space<vmem>>, %arg3: memref<8x4xf32, #tpu.memory_space<vmem>>) attributes {dimension_semantics = [#tpu.dimension_semantics<parallel>, #tpu.dimension_semantics<arbitrary>], iteration_bounds = array<i64: 1, 1>, scalar_prefetch = 0 : i64, scratch_operands = 0 : i64, tpu.core_type = #tpu.core_type<tc>, window_params = [{transform_indices = @transform_0, window_bounds = array<i64: 8, 4, 256>}, {transform_indices = @transform_1, window_bounds = array<i64: 8, 4>}]} {
    %c0_i32 = arith.constant 0 : i32
    %0 = arith.cmpi eq, %arg1, %c0_i32 : i32
    %1 = arith.extui %0 : i1 to i32
    %c0_i32_0 = arith.constant 0 : i32
    %2 = arith.cmpi ne, %1, %c0_i32_0 : i32
    scf.if %2 {
      %cst_7 = arith.constant 0.000000e+00 : f32
      %8 = vector.broadcast %cst_7 : f32 to vector<8x4xf32>
      %c0_8 = arith.constant 0 : index
      %c0_9 = arith.constant 0 : index
      %9 = vector.load %arg3[%c0_8, %c0_9] : memref<8x4xf32, #tpu.memory_space<vmem>>, vector<8x4xf32>
      tpu.vector_store %arg3[%c0_8, %c0_9], %8 {strides = array<i32>} : memref<8x4xf32, #tpu.memory_space<vmem>>, vector<8x4xf32>,
    } else {
    }
    %c0 = arith.constant 0 : index
    %c0_1 = arith.constant 0 : index
    %3 = vector.load %arg3[%c0, %c0_1] : memref<8x4xf32, #tpu.memory_space<vmem>>, vector<8x4xf32>
    %c0_2 = arith.constant 0 : index
    %c0_3 = arith.constant 0 : index
    %c0_4 = arith.constant 0 : index
    %4 = vector.load %arg2[%c0_2, %c0_3, %c0_4] : memref<8x4x256xf32, #tpu.memory_space<vmem>>, vector<8x4x256xf32>
    %cst = arith.constant dense<0.000000e+00> : vector<8x4xf32>
    %5 = vector.multi_reduction <add>, %4, %cst [2] : vector<8x4x256xf32> to vector<8x4xf32>
    %6 = arith.addf %3, %5 : vector<8x4xf32>
    %c0_5 = arith.constant 0 : index
    %c0_6 = arith.constant 0 : index
    %7 = vector.load %arg3[%c0_5, %c0_6] : memref<8x4xf32, #tpu.memory_space<vmem>>, vector<8x4xf32>
    tpu.vector_store %arg3[%c0_5, %c0_6], %6 {strides = array<i32>} : memref<8x4xf32, #tpu.memory_space<vmem>>, vector<8x4xf32>,
    return
  }
  func.func @transform_0(%arg0: i32, %arg1: i32) -> (i32, i32, i32) {
    %c0_i32 = arith.constant 0 : i32
    %c0_i32_0 = arith.constant 0 : i32
    return %arg0, %c0_i32, %arg1 : i32, i32, i32
  }
  func.func @transform_1(%arg0: i32, %arg1: i32) -> (i32, i32) {
    %c0_i32 = arith.constant 0 : i32
    %c0_i32_0 = arith.constant 0 : i32
    return %arg0, %c0_i32 : i32, i32
  }
}

module attributes {stable_mosaic.version = 11 : i64} {
  func.func @_head_mix_kernel(%arg0: i32, %arg1: memref<1x1xf32, #tpu.memory_space<smem>>, %arg2: memref<8x128xf32, #tpu.memory_space<vmem>>, %arg3: memref<8x128xf32, #tpu.memory_space<vmem>>, %arg4: memref<128x128xf32, #tpu.memory_space<vmem>>, %arg5: memref<1x128xf32, #tpu.memory_space<vmem>>, %arg6: memref<128x128xf32, #tpu.memory_space<vmem>>, %arg7: memref<1x128xf32, #tpu.memory_space<vmem>>, %arg8: memref<8x128xf32, #tpu.memory_space<vmem>>) attributes {dimension_semantics = [#tpu.dimension_semantics<parallel>], iteration_bounds = array<i64: 1>, scalar_prefetch = 0 : i64, scratch_operands = 0 : i64, tpu.core_type = #tpu.core_type<tc>, window_params = [{transform_indices = @transform_0, window_bounds = array<i64: 1, 1>}, {transform_indices = @transform_1, window_bounds = array<i64: 8, 128>}, {transform_indices = @transform_2, window_bounds = array<i64: 8, 128>}, {pipeline_mode = #tpu.pipeline_mode<synchronous>, transform_indices = @transform_3, window_bounds = array<i64: 128, 128>}, {pipeline_mode = #tpu.pipeline_mode<synchronous>, transform_indices = @transform_4, window_bounds = array<i64: 1, 128>}, {pipeline_mode = #tpu.pipeline_mode<synchronous>, transform_indices = @transform_5, window_bounds = array<i64: 128, 128>}, {pipeline_mode = #tpu.pipeline_mode<synchronous>, transform_indices = @transform_6, window_bounds = array<i64: 1, 128>}, {transform_indices = @transform_7, window_bounds = array<i64: 8, 128>}]} {
    %c0 = arith.constant 0 : index
    %c0_0 = arith.constant 0 : index
    %0 = memref.load %arg1[%c0, %c0_0] : memref<1x1xf32, #tpu.memory_space<smem>>
    %c0_1 = arith.constant 0 : index
    %c0_2 = arith.constant 0 : index
    %1 = vector.load %arg2[%c0_1, %c0_2] : memref<8x128xf32, #tpu.memory_space<vmem>>, vector<8x128xf32>
    %2 = vector.broadcast %0 : f32 to vector<8x128xf32>
    %3 = arith.mulf %2, %1 : vector<8x128xf32>
    %cst = arith.constant 1.000000e+00 : f32
    %4 = arith.subf %cst, %0 : f32
    %c0_3 = arith.constant 0 : index
    %c0_4 = arith.constant 0 : index
    %5 = vector.load %arg3[%c0_3, %c0_4] : memref<8x128xf32, #tpu.memory_space<vmem>>, vector<8x128xf32>
    %6 = vector.broadcast %4 : f32 to vector<8x128xf32>
    %7 = arith.mulf %6, %5 : vector<8x128xf32>
    %8 = arith.addf %3, %7 : vector<8x128xf32>
    %c0_5 = arith.constant 0 : index
    %c0_6 = arith.constant 0 : index
    %9 = vector.load %arg4[%c0_5, %c0_6] : memref<128x128xf32, #tpu.memory_space<vmem>>, vector<128x128xf32>
    %cst_7 = arith.constant dense<0.000000e+00> : vector<8x128xf32>
    %10 = tpu.matmul %8, %9, %cst_7 {dimension_numbers = #tpu.dot_dimension_numbers<[1], [0], [0], [1], [0, 0, 1, 1], [], []>} : vector<8x128xf32>, vector<128x128xf32>, vector<8x128xf32> -> vector<8x128xf32>
    %c0_8 = arith.constant 0 : index
    %c0_9 = arith.constant 0 : index
    %11 = vector.load %arg5[%c0_8, %c0_9] : memref<1x128xf32, #tpu.memory_space<vmem>>, vector<1x128xf32>
    %12 = vector.broadcast %11 : vector<1x128xf32> to vector<8x128xf32>
    %13 = arith.addf %10, %12 : vector<8x128xf32>
    %cst_10 = arith.constant 0.000000e+00 : f32
    %14 = vector.broadcast %cst_10 : f32 to vector<8x128xf32>
    %15 = arith.maximumf %13, %14 : vector<8x128xf32>
    %c0_11 = arith.constant 0 : index
    %c0_12 = arith.constant 0 : index
    %16 = vector.load %arg6[%c0_11, %c0_12] : memref<128x128xf32, #tpu.memory_space<vmem>>, vector<128x128xf32>
    %cst_13 = arith.constant dense<0.000000e+00> : vector<8x128xf32>
    %17 = tpu.matmul %15, %16, %cst_13 {dimension_numbers = #tpu.dot_dimension_numbers<[1], [0], [0], [1], [0, 0, 1, 1], [], []>} : vector<8x128xf32>, vector<128x128xf32>, vector<8x128xf32> -> vector<8x128xf32>
    %c0_14 = arith.constant 0 : index
    %c0_15 = arith.constant 0 : index
    %18 = vector.load %arg7[%c0_14, %c0_15] : memref<1x128xf32, #tpu.memory_space<vmem>>, vector<1x128xf32>
    %19 = vector.broadcast %18 : vector<1x128xf32> to vector<8x128xf32>
    %20 = arith.addf %17, %19 : vector<8x128xf32>
    %c0_16 = arith.constant 0 : index
    %c0_17 = arith.constant 0 : index
    %21 = vector.load %arg8[%c0_16, %c0_17] : memref<8x128xf32, #tpu.memory_space<vmem>>, vector<8x128xf32>
    tpu.vector_store %arg8[%c0_16, %c0_17], %20 {strides = array<i32>} : memref<8x128xf32, #tpu.memory_space<vmem>>, vector<8x128xf32>,
    return
  }
  func.func @transform_0(%arg0: i32) -> (i32, i32) {
    %c0_i32 = arith.constant 0 : i32
    %c0_i32_0 = arith.constant 0 : i32
    %c0_i32_1 = arith.constant 0 : i32
    return %c0_i32, %c0_i32_0 : i32, i32
  }
  func.func @transform_1(%arg0: i32) -> (i32, i32) {
    %c0_i32 = arith.constant 0 : i32
    %c0_i32_0 = arith.constant 0 : i32
    return %arg0, %c0_i32 : i32, i32
  }
  func.func @transform_2(%arg0: i32) -> (i32, i32) {
    %c0_i32 = arith.constant 0 : i32
    %c0_i32_0 = arith.constant 0 : i32
    return %arg0, %c0_i32 : i32, i32
  }
  func.func @transform_3(%arg0: i32) -> (i32, i32) {
    %c0_i32 = arith.constant 0 : i32
    %c0_i32_0 = arith.constant 0 : i32
    %c0_i32_1 = arith.constant 0 : i32
    return %c0_i32, %c0_i32_0 : i32, i32
  }
  func.func @transform_4(%arg0: i32) -> (i32, i32) {
    %c0_i32 = arith.constant 0 : i32
    %c0_i32_0 = arith.constant 0 : i32
    %c0_i32_1 = arith.constant 0 : i32
    return %c0_i32, %c0_i32_0 : i32, i32
  }
  func.func @transform_5(%arg0: i32) -> (i32, i32) {
    %c0_i32 = arith.constant 0 : i32
    %c0_i32_0 = arith.constant 0 : i32
    %c0_i32_1 = arith.constant 0 : i32
    return %c0_i32, %c0_i32_0 : i32, i32
  }
  func.func @transform_6(%arg0: i32) -> (i32, i32) {
    %c0_i32 = arith.constant 0 : i32
    %c0_i32_0 = arith.constant 0 : i32
    %c0_i32_1 = arith.constant 0 : i32
    return %c0_i32, %c0_i32_0 : i32, i32
  }
  func.func @transform_7(%arg0: i32) -> (i32, i32) {
    %c0_i32 = arith.constant 0 : i32
    %c0_i32_0 = arith.constant 0 : i32
    return %arg0, %c0_i32 : i32, i32
  }
}

module attributes {stable_mosaic.version = 11 : i64} {
  func.func @_mixup_las_loss_kernel(%arg0: i32, %arg1: memref<1x1xf32, #tpu.memory_space<smem>>, %arg2: memref<8x128xf32, #tpu.memory_space<vmem>>, %arg3: memref<8x1xi32, #tpu.memory_space<vmem>>, %arg4: memref<8x1xi32, #tpu.memory_space<vmem>>, %arg5: memref<1x128xf32, #tpu.memory_space<vmem>>, %arg6: memref<1x1xf32, #tpu.memory_space<smem>>, %arg7: memref<1xf32, #tpu.memory_space<smem>>) attributes {dimension_semantics = [#tpu.dimension_semantics<arbitrary>], iteration_bounds = array<i64: 1>, scalar_prefetch = 0 : i64, scratch_operands = 1 : i64, tpu.core_type = #tpu.core_type<tc>, window_params = [{transform_indices = @transform_0, window_bounds = array<i64: 1, 1>}, {transform_indices = @transform_1, window_bounds = array<i64: 8, 128>}, {transform_indices = @transform_2, window_bounds = array<i64: 8, 1>}, {transform_indices = @transform_3, window_bounds = array<i64: 8, 1>}, {pipeline_mode = #tpu.pipeline_mode<synchronous>, transform_indices = @transform_4, window_bounds = array<i64: 1, 128>}, {transform_indices = @transform_5, window_bounds = array<i64: 1, 1>}]} {
    %c0_i32 = arith.constant 0 : i32
    %0 = arith.cmpi eq, %arg0, %c0_i32 : i32
    %1 = arith.extui %0 : i1 to i32
    %c0_i32_0 = arith.constant 0 : i32
    %2 = arith.cmpi ne, %1, %c0_i32_0 : i32
    scf.if %2 {
      %cst_30 = arith.constant 0.000000e+00 : f32
      %c0_31 = arith.constant 0 : index
      %86 = memref.load %arg7[%c0_31] : memref<1xf32, #tpu.memory_space<smem>>
      memref.store %cst_30, %arg7[%c0_31] : memref<1xf32, #tpu.memory_space<smem>>
    } else {
    }
    %c0 = arith.constant 0 : index
    %c0_1 = arith.constant 0 : index
    %3 = vector.load %arg2[%c0, %c0_1] : memref<8x128xf32, #tpu.memory_space<vmem>>, vector<8x128xf32>
    %4 = tpu.iota {dimensions = array<i32: 1>} : vector<8x128xi32>
    %c10_i32 = arith.constant 10 : i32
    %5 = vector.broadcast %c10_i32 : i32 to vector<8x128xi32>
    %6 = arith.cmpi slt, %4, %5 : vector<8x128xi32>
    %cst = arith.constant -1.000000e+30 : f32
    %7 = vector.broadcast %cst : f32 to vector<8x128xf32>
    %8 = arith.select %6, %3, %7 : vector<8x128xi1>, vector<8x128xf32>
    %cst_2 = arith.constant dense<0xFF800000> : vector<8xf32>
    %9 = vector.multi_reduction <maximumf>, %8, %cst_2 [1] : vector<8x128xf32> to vector<8xf32>
    %10 = vector.shape_cast %9 : vector<8xf32> to vector<8x1xf32>
    %11 = vector.broadcast %10 : vector<8x1xf32> to vector<8x128xf32>
    %12 = arith.subf %8, %11 : vector<8x128xf32>
    %13 = math.exp %12 : vector<8x128xf32>
    %cst_3 = arith.constant 0.000000e+00 : f32
    %14 = vector.broadcast %cst_3 : f32 to vector<8x128xf32>
    %15 = arith.select %6, %13, %14 : vector<8x128xi1>, vector<8x128xf32>
    %cst_4 = arith.constant dense<0.000000e+00> : vector<8xf32>
    %16 = vector.multi_reduction <add>, %15, %cst_4 [1] : vector<8x128xf32> to vector<8xf32>
    %17 = vector.shape_cast %16 : vector<8xf32> to vector<8x1xf32>
    %18 = math.log %17 : vector<8x1xf32>
    %19 = vector.broadcast %18 : vector<8x1xf32> to vector<8x128xf32>
    %20 = arith.subf %12, %19 : vector<8x128xf32>
    %cst_5 = arith.constant 0.000000e+00 : f32
    %21 = vector.broadcast %cst_5 : f32 to vector<8x128xf32>
    %22 = arith.select %6, %20, %21 : vector<8x128xi1>, vector<8x128xf32>
    %cst_6 = arith.constant dense<0.000000e+00> : vector<8xf32>
    %23 = vector.multi_reduction <add>, %22, %cst_6 [1] : vector<8x128xf32> to vector<8xf32>
    %24 = vector.shape_cast %23 : vector<8xf32> to vector<8x1xf32>
    %cst_7 = arith.constant 0.000000e+00 : f32
    %25 = vector.broadcast %cst_7 : f32 to vector<8x1xf32>
    %26 = arith.subf %25, %24 : vector<8x1xf32>
    %cst_8 = arith.constant 1.000000e-01 : f32
    %27 = vector.broadcast %cst_8 : f32 to vector<8x1xf32>
    %28 = arith.mulf %26, %27 : vector<8x1xf32>
    %c0_9 = arith.constant 0 : index
    %c0_10 = arith.constant 0 : index
    %29 = memref.load %arg1[%c0_9, %c0_10] : memref<1x1xf32, #tpu.memory_space<smem>>
    %c0_11 = arith.constant 0 : index
    %c0_12 = arith.constant 0 : index
    %30 = vector.load %arg5[%c0_11, %c0_12] : memref<1x128xf32, #tpu.memory_space<vmem>>, vector<1x128xf32>
    %c0_13 = arith.constant 0 : index
    %c0_14 = arith.constant 0 : index
    %31 = vector.load %arg3[%c0_13, %c0_14] : memref<8x1xi32, #tpu.memory_space<vmem>>, vector<8x1xi32>
    %32 = vector.broadcast %31 : vector<8x1xi32> to vector<8x128xi32>
    %33 = arith.cmpi eq, %4, %32 : vector<8x128xi32>
    %34 = arith.extui %33 : vector<8x128xi1> to vector<8x128xi32>
    %35 = arith.sitofp %34 : vector<8x128xi32> to vector<8x128xf32>
    %c0_15 = arith.constant 0 : index
    %c0_16 = arith.constant 0 : index
    %36 = vector.load %arg4[%c0_15, %c0_16] : memref<8x1xi32, #tpu.memory_space<vmem>>, vector<8x1xi32>
    %37 = vector.broadcast %36 : vector<8x1xi32> to vector<8x128xi32>
    %38 = arith.cmpi eq, %4, %37 : vector<8x128xi32>
    %39 = arith.extui %38 : vector<8x128xi1> to vector<8x128xi32>
    %40 = arith.sitofp %39 : vector<8x128xi32> to vector<8x128xf32>
    %41 = vector.broadcast %30 : vector<1x128xf32> to vector<8x128xf32>
    %42 = arith.mulf %41, %35 : vector<8x128xf32>
    %cst_17 = arith.constant dense<0.000000e+00> : vector<8xf32>
    %43 = vector.multi_reduction <add>, %42, %cst_17 [1] : vector<8x128xf32> to vector<8xf32>
    %44 = vector.shape_cast %43 : vector<8xf32> to vector<8x1xf32>
    %45 = vector.broadcast %30 : vector<1x128xf32> to vector<8x128xf32>
    %46 = arith.mulf %45, %40 : vector<8x128xf32>
    %cst_18 = arith.constant dense<0.000000e+00> : vector<8xf32>
    %47 = vector.multi_reduction <add>, %46, %cst_18 [1] : vector<8x128xf32> to vector<8xf32>
    %48 = vector.shape_cast %47 : vector<8xf32> to vector<8x1xf32>
    %cst_19 = arith.constant 1.000000e+00 : f32
    %49 = vector.broadcast %cst_19 : f32 to vector<8x1xf32>
    %50 = arith.subf %49, %44 : vector<8x1xf32>
    %51 = vector.broadcast %29 : f32 to vector<8x1xf32>
    %52 = arith.mulf %51, %50 : vector<8x1xf32>
    %53 = vector.broadcast %52 : vector<8x1xf32> to vector<8x128xf32>
    %54 = arith.mulf %53, %35 : vector<8x128xf32>
    %cst_20 = arith.constant 1.000000e+00 : f32
    %55 = arith.subf %cst_20, %29 : f32
    %cst_21 = arith.constant 1.000000e+00 : f32
    %56 = vector.broadcast %cst_21 : f32 to vector<8x1xf32>
    %57 = arith.subf %56, %48 : vector<8x1xf32>
    %58 = vector.broadcast %55 : f32 to vector<8x1xf32>
    %59 = arith.mulf %58, %57 : vector<8x1xf32>
    %60 = vector.broadcast %59 : vector<8x1xf32> to vector<8x128xf32>
    %61 = arith.mulf %60, %40 : vector<8x128xf32>
    %62 = arith.addf %54, %61 : vector<8x128xf32>
    %63 = vector.broadcast %29 : f32 to vector<8x1xf32>
    %64 = arith.mulf %63, %44 : vector<8x1xf32>
    %cst_22 = arith.constant 1.000000e+00 : f32
    %65 = arith.subf %cst_22, %29 : f32
    %66 = vector.broadcast %65 : f32 to vector<8x1xf32>
    %67 = arith.mulf %66, %48 : vector<8x1xf32>
    %68 = arith.addf %64, %67 : vector<8x1xf32>
    %69 = arith.mulf %20, %62 : vector<8x128xf32>
    %cst_23 = arith.constant dense<0.000000e+00> : vector<8xf32>
    %70 = vector.multi_reduction <add>, %69, %cst_23 [1] : vector<8x128xf32> to vector<8xf32>
    %71 = vector.shape_cast %70 : vector<8xf32> to vector<8x1xf32>
    %cst_24 = arith.constant 0.000000e+00 : f32
    %72 = vector.broadcast %cst_24 : f32 to vector<8x1xf32>
    %73 = arith.subf %72, %71 : vector<8x1xf32>
    %74 = arith.mulf %68, %28 : vector<8x1xf32>
    %75 = arith.addf %73, %74 : vector<8x1xf32>
    %c0_25 = arith.constant 0 : index
    %76 = memref.load %arg7[%c0_25] : memref<1xf32, #tpu.memory_space<smem>>
    %77 = vector.shape_cast %75 : vector<8x1xf32> to vector<1x8x1xf32>
    %cst_26 = arith.constant dense<0.000000e+00> : vector<1xf32>
    %78 = vector.multi_reduction <add>, %77, %cst_26 [1, 2] : vector<1x8x1xf32> to vector<1xf32>
    %79 = vector.shape_cast %78 : vector<1xf32> to vector<1x1x1xf32>
    %80 = vector.extract %79[0, 0, 0] : f32 from vector<1x1x1xf32>
    %81 = arith.addf %76, %80 : f32
    %c0_27 = arith.constant 0 : index
    %82 = memref.load %arg7[%c0_27] : memref<1xf32, #tpu.memory_space<smem>>
    memref.store %81, %arg7[%c0_27] : memref<1xf32, #tpu.memory_space<smem>>
    %c0_i32_28 = arith.constant 0 : i32
    %83 = arith.cmpi eq, %arg0, %c0_i32_28 : i32
    %84 = arith.extui %83 : i1 to i32
    %c0_i32_29 = arith.constant 0 : i32
    %85 = arith.cmpi ne, %84, %c0_i32_29 : i32
    scf.if %85 {
      %c0_30 = arith.constant 0 : index
      %86 = memref.load %arg7[%c0_30] : memref<1xf32, #tpu.memory_space<smem>>
      %cst_31 = arith.constant 1.250000e-01 : f32
      %87 = arith.mulf %86, %cst_31 : f32
      %c0_32 = arith.constant 0 : index
      %c0_33 = arith.constant 0 : index
      %88 = memref.load %arg6[%c0_32, %c0_33] : memref<1x1xf32, #tpu.memory_space<smem>>
      memref.store %87, %arg6[%c0_32, %c0_33] : memref<1x1xf32, #tpu.memory_space<smem>>
    } else {
    }
    return
  }
  func.func @transform_0(%arg0: i32) -> (i32, i32) {
    %c0_i32 = arith.constant 0 : i32
    %c0_i32_0 = arith.constant 0 : i32
    %c0_i32_1 = arith.constant 0 : i32
    return %c0_i32, %c0_i32_0 : i32, i32
  }
  func.func @transform_1(%arg0: i32) -> (i32, i32) {
    %c0_i32 = arith.constant 0 : i32
    %c0_i32_0 = arith.constant 0 : i32
    return %arg0, %c0_i32 : i32, i32
  }
  func.func @transform_2(%arg0: i32) -> (i32, i32) {
    %c0_i32 = arith.constant 0 : i32
    %c0_i32_0 = arith.constant 0 : i32
    return %arg0, %c0_i32 : i32, i32
  }
  func.func @transform_3(%arg0: i32) -> (i32, i32) {
    %c0_i32 = arith.constant 0 : i32
    %c0_i32_0 = arith.constant 0 : i32
    return %arg0, %c0_i32 : i32, i32
  }
  func.func @transform_4(%arg0: i32) -> (i32, i32) {
    %c0_i32 = arith.constant 0 : i32
    %c0_i32_0 = arith.constant 0 : i32
    %c0_i32_1 = arith.constant 0 : i32
    return %c0_i32, %c0_i32_0 : i32, i32
  }
  func.func @transform_5(%arg0: i32) -> (i32, i32) {
    %c0_i32 = arith.constant 0 : i32
    %c0_i32_0 = arith.constant 0 : i32
    %c0_i32_1 = arith.constant 0 : i32
    return %c0_i32, %c0_i32_0 : i32, i32
  }
}

</mosaic_0001>

<bundles_post_ra>
// kernel: _train_forward.3
= control target key start
LH: loop header
LB: loop body
LE: loop exit
PB: predicated region body
PF: predicated region fallthrough
CT: control target
= control target key end

     0   :  { %vm47_vm0 = vcmask 1043456   ;;  %vm12_vm1 = vcmask 31744   ;;  %v161_v40 = vmov 0.0   ;;  %v96_v41 = vlaneseq  ;;  %s223_s0 = inlined_call_operand.vmem [shape: f32[8,4,256], index: 0, kind: input, shape index: {}]   ;;  %s224_s1 = inlined_call_operand.vmem [shape: f32[8,4], index: 1, kind: output, shape index: {}]  }
   0x1   :  { %v15_v0 = vld [vmem:[%s223_s0] sm:$0xff]  ;;  %v17_v1 = vld [vmem:[%s223_s0 + $0x10] sm:$0xff]  ;;  %v16_v2 = vld [vmem:[%s223_s0 + $0x8] sm:$0xff]  ;;  %13 = vst.msk [vmem:[%s224_s1] sm:$0xff] %vm12_vm1, %v161_v40  ;;  %vm130_vm2 = vcmask 1041409   ;;  %vm132_vm3 = vcmask 1042434  }
   0x2   :  { %v31_v3 = vcombine.high %v15_v0, %v15_v0  ;;  %v48_v4 = vsel %vm47_vm0, %v15_v0, 0.0  ;;  %v33_v5 = vcombine.high %v17_v1, %v17_v1  ;;  %v58_v6 = vsel %vm47_vm0, %v17_v1, 0.0  ;;  %v18_v7 = vld [vmem:[%s223_s0 + $0x18] sm:$0xff]  ;;  %v19_v8 = vld [vmem:[%s223_s0 + $0x20] sm:$0xff]  ;;  %v20_v12 = vld [vmem:[%s223_s0 + $0x28] sm:$0xff] }
   0x3   :  { %v32_v9 = vcombine.high %v16_v2, %v16_v2  ;;  %v53_v10 = vsel %vm47_vm0, %v16_v2, 0.0  ;;  %v34_v11 = vcombine.high %v18_v7, %v18_v7  ;;  %v63_v15 = vsel %vm47_vm0, %v18_v7, 0.0  ;;  %v21_v21 = vld [vmem:[%s223_s0 + $0x30] sm:$0xff]  ;;  %v22_v22 = vld [vmem:[%s223_s0 + $0x38] sm:$0xff] }
   0x4   :  { %v49_v13 = vsel %vm47_vm0, %v31_v3, 0.0  ;;  %v59_v14 = vsel %vm47_vm0, %v33_v5, 0.0  ;;  %v35_v16 = vcombine.high %v19_v8, %v19_v8  ;;  %v36_v23 = vcombine.high %v20_v12, %v20_v12 }
   0x5   :  { %v50_v17 = vadd.f32 %v49_v13, %v48_v4  ;;  %v60_v18 = vadd.f32 %v59_v14, %v58_v6  ;;  %v54_v19 = vsel %vm47_vm0, %v32_v9, 0.0  ;;  %v64_v20 = vsel %vm47_vm0, %v34_v11, 0.0 }
   0x6   :  { %v55_v24 = vadd.f32 %v54_v19, %v53_v10  ;;  %v65_v25 = vadd.f32 %v64_v20, %v63_v15  ;;  %v68_v26 = vsel %vm47_vm0, %v19_v8, 0.0  ;;  %v69_v27 = vsel %vm47_vm0, %v35_v16, 0.0 }
   0x7   :  { %51 = vadd.xlane.f32.xlu0 %v50_v17  ;;  %61 = vadd.xlane.f32.xlu1 %v60_v18  ;;  %v73_v28 = vsel %vm47_vm0, %v20_v12, 0.0  ;;  %v74_v29 = vsel %vm47_vm0, %v36_v23, 0.0  ;;  %v37_v30 = vcombine.high %v21_v21, %v21_v21  ;;  %v38_v31 = vcombine.high %v22_v22, %v22_v22 }
   0x8   :  { %v70_v32 = vadd.f32 %v69_v27, %v68_v26  ;;  %v75_v33 = vadd.f32 %v74_v29, %v73_v28  ;;  %v78_v34 = vsel %vm47_vm0, %v21_v21, 0.0  ;;  %v83_v36 = vsel %vm47_vm0, %v22_v22, 0.0  ;;  %v14_v2 = vld [vmem:[%s224_s1] sm:$0xff] }
   0x9   :  { %v79_v35 = vsel %vm47_vm0, %v37_v30, 0.0  ;;  %v84_v37 = vsel %vm47_vm0, %v38_v31, 0.0  ;;  %v97_v42 = vand.u32 127, %v96_v41  ;;  %v99_v43 = vshrl.u32 %v96_v41, 7 }
   0xa   :  { %v80_v38 = vadd.f32 %v79_v35, %v78_v34  ;;  %v85_v39 = vadd.f32 %v84_v37, %v83_v36  ;;  %vm134_vm4 = vcmask 1043459   ;;  %vm136_vm5 = vcmask 1044484  }
   0xb   :  { %56 = vadd.xlane.f32.xlu0 %v55_v24  ;;  %66 = vadd.xlane.f32.xlu1 %v65_v25  ;;  %v100_v46 = vsub.s32 %v97_v42, %v99_v43  ;;  %vm138_vm6 = vcmask 1045509   ;;  %vm140_vm7 = vcmask 1046534   ;;  %vm142_vm8 = vcmask 1047559  }
   0xf   :  { %71 = vadd.xlane.f32.xlu0 %v70_v32  ;;  %76 = vadd.xlane.f32.xlu1 %v75_v33 }
  0x13   :  { %81 = vadd.xlane.f32.xlu0 %v80_v38  ;;  %86 = vadd.xlane.f32.xlu1 %v85_v39 }
  0x94   :  { %v52_v44 = vpop.xlane.xlu0 %51  ;;  %v62_v45 = vpop.xlane.xlu1 %61 }
  0x95   :  { %v101_v49 = vrot.slane %v52_v44, %v100_v46  ;;  %v109_v52 = vrot.slane %v62_v45, %v100_v46 }
  0x98   :  { %v57_v47 = vpop.xlane.xlu0 %56  ;;  %v67_v48 = vpop.xlane.xlu1 %66 }
  0x99   :  { %v105_v50 = vrot.slane %v57_v47, %v100_v46  ;;  %v113_v51 = vrot.slane %v67_v48, %v100_v46 }
  0x9b   :  { %v131_v53 = vsel %vm130_vm2, %v105_v50, %v101_v49 }
  0x9c   :  { %v133_v54 = vsel %vm132_vm3, %v109_v52, %v131_v53  ;;  %v72_v55 = vpop.xlane.xlu0 %71  ;;  %v77_v56 = vpop.xlane.xlu1 %76 }
  0x9d   :  { %v135_v57 = vsel %vm134_vm4, %v113_v51, %v133_v54  ;;  %v117_v58 = vrot.slane %v72_v55, %v100_v46  ;;  %v121_v59 = vrot.slane %v77_v56, %v100_v46 }
  0x9f   :  { %v137_v60 = vsel %vm136_vm5, %v117_v58, %v135_v57 }
  0xa0   :  { %v82_v61 = vpop.xlane.xlu0 %81  ;;  %v87_v62 = vpop.xlane.xlu1 %86  ;;  %v139_v1 = vsel %vm138_vm6, %v121_v59, %v137_v60 }
  0xa1   :  { %v125_v63 = vrot.slane %v82_v61, %v100_v46  ;;  %v129_v0 = vrot.slane %v87_v62, %v100_v46 }
  0xa3   :  { %v141_v3 = vsel %vm140_vm7, %v125_v63, %v139_v1 }
  0xa4   :  { %v143_v4 = vsel %vm142_vm8, %v129_v0, %v141_v3 }
  0xa5   :  { %v145_v5 = vadd.f32 %v143_v4, %v14_v2 }
  0xa7   :  { %147 = vst.msk [vmem:[%s224_s1] sm:$0xff] %vm12_vm1, %v145_v5 }

// kernel: _train_forward.4
= control target key start
LH: loop header
LB: loop body
LE: loop exit
PB: predicated region body
PF: predicated region fallthrough
CT: control target
= control target key end

     0   :  { %v385_v0 = vmov 0.0|0.0   ;;  %vm386_vm0 = vmmov 0   ;;  %v387_v4 = vmov 0.0   ;;  %s561_s3 = inlined_call_operand.vmem [shape: f32[128,128], index: 3, kind: input, shape index: {}]   ;;  %s562_s5 = inlined_call_operand.vmem [shape: f32[128,128], index: 5, kind: input, shape index: {}]   ;;  %s563_s0 = inlined_call_operand.<no memory space> [shape: f32[1,1], index: 0, kind: input, shape index: {}]   ;;  %s564_s1 = inlined_call_operand.vmem [shape: f32[8,128], index: 1, kind: input, shape index: {}]   ;;  %s565_s2 = inlined_call_operand.vmem [shape: f32[8,128], index: 2, kind: input, shape index: {}]   ;;  %s566_s4 = inlined_call_operand.vmem [shape: f32[1,128], index: 4, kind: input, shape index: {}]   ;;  %s567_s6 = inlined_call_operand.vmem [shape: f32[1,128], index: 6, kind: input, shape index: {}]   ;;  %s568_s7 = inlined_call_operand.vmem [shape: f32[8,128], index: 7, kind: output, shape index: {}]  }
   0x1   :  { %334 = vmatprep.subr.bf16.mxu0 %v385_v0  ;;  %v36_v1 = vld [vmem:[%s561_s3] sm:$0xff]  ;;  %v37_v2 = vld [vmem:[%s561_s3 + $0x8] sm:$0xff]  ;;  %v38_v3 = vld [vmem:[%s561_s3 + $0x10] sm:$0xff]  ;;  %296 = vmatprep.mubr.msk.f32.mxu0 %vm386_vm0, %v387_v4  ;;  %s31_s24 = ssub.f32 1.0, %s563_s0  ;;  %v29_v41 = vstv %s563_s0 }
   0x2   :  { %v335_v5 = vpack.c.bf16 %v37_v2, %v36_v1  ;;  %v39_v6 = vld [vmem:[%s561_s3 + $0x18] sm:$0xff]  ;;  %358 = vmatprep.subr.bf16.mxu1 %v385_v0  ;;  %331 = vmatprep.mubr.msk.f32.mxu1 %vm386_vm0, %v387_v4  ;;  %v40_v8 = vld [vmem:[%s561_s3 + $0x20] sm:$0xff]  ;;  %v41_v9 = vld [vmem:[%s561_s3 + $0x28] sm:$0xff] }
   0x3   :  { %v338_v7 = vpack.c.bf16 %v39_v6, %v38_v3  ;;  %v130_v10 = vld [vmem:[%s562_s5] sm:$0xff]  ;;  %v131_v11 = vld [vmem:[%s562_s5 + $0x8] sm:$0xff]  ;;  %v132_v12 = vld [vmem:[%s562_s5 + $0x10] sm:$0xff]  ;;  %v341_v13 = vpack.c.bf16 %v41_v9, %v40_v8  ;;  %v33_v43 = vstv %s31_s24 }
   0x4   :  { %336 = vmatpush3.bf16.msra.mxu0 %v335_v5  ;;  %v359_v14 = vpack.c.bf16 %v131_v11, %v130_v10  ;;  %v133_v15 = vld [vmem:[%s562_s5 + $0x18] sm:$0xff]  ;;  %v42_v16 = vld [vmem:[%s561_s3 + $0x30] sm:$0xff]  ;;  %v134_v19 = vld [vmem:[%s562_s5 + $0x20] sm:$0xff] }
   0x5   :  { %337 = vmatprep.subr.bf16.mxu0 %v385_v0  ;;  %v43_v17 = vld [vmem:[%s561_s3 + $0x38] sm:$0xff]  ;;  %v362_v18 = vpack.c.bf16 %v133_v15, %v132_v12  ;;  %v135_v20 = vld [vmem:[%s562_s5 + $0x28] sm:$0xff]  ;;  %v44_v22 = vld [vmem:[%s561_s3 + $0x40] sm:$0xff] }
   0x6   :  { %360 = vmatpush3.bf16.msra.mxu1 %v359_v14  ;;  %v344_v21 = vpack.c.bf16 %v43_v17, %v42_v16  ;;  %v45_v23 = vld [vmem:[%s561_s3 + $0x48] sm:$0xff]  ;;  %v365_v24 = vpack.c.bf16 %v135_v20, %v134_v19  ;;  %v136_v25 = vld [vmem:[%s562_s5 + $0x30] sm:$0xff]  ;;  %v137_v26 = vld [vmem:[%s562_s5 + $0x38] sm:$0xff] }
   0x7   :  { %361 = vmatprep.subr.bf16.mxu1 %v385_v0  ;;  %v347_v27 = vpack.c.bf16 %v45_v23, %v44_v22  ;;  %v46_v28 = vld [vmem:[%s561_s3 + $0x50] sm:$0xff]  ;;  %v47_v29 = vld [vmem:[%s561_s3 + $0x58] sm:$0xff]  ;;  %v368_v30 = vpack.c.bf16 %v137_v26, %v136_v25  ;;  %v138_v31 = vld [vmem:[%s562_s5 + $0x40] sm:$0xff] }
   0x8   :  { %339 = vmatpush3.bf16.msra.mxu0 %v338_v7  ;;  %v139_v32 = vld [vmem:[%s562_s5 + $0x48] sm:$0xff]  ;;  %v350_v33 = vpack.c.bf16 %v47_v29, %v46_v28  ;;  %v48_v34 = vld [vmem:[%s561_s3 + $0x60] sm:$0xff]  ;;  %v140_v37 = vld [vmem:[%s562_s5 + $0x50] sm:$0xff] }
   0x9   :  { %340 = vmatprep.subr.bf16.mxu0 %v385_v0  ;;  %v49_v35 = vld [vmem:[%s561_s3 + $0x68] sm:$0xff]  ;;  %v371_v36 = vpack.c.bf16 %v139_v32, %v138_v31  ;;  %v141_v38 = vld [vmem:[%s562_s5 + $0x58] sm:$0xff]  ;;  %v28_v40 = vld [vmem:[%s564_s1] sm:$0xff] }
   0xa   :  { %363 = vmatpush3.bf16.msra.mxu1 %v362_v18  ;;  %v353_v39 = vpack.c.bf16 %v49_v35, %v48_v34  ;;  %v32_v42 = vld [vmem:[%s565_s2] sm:$0xff]  ;;  %v50_v44 = vld [vmem:[%s561_s3 + $0x70] sm:$0xff]  ;;  %v51_v45 = vld [vmem:[%s561_s3 + $0x78] sm:$0xff]  ;;  %v374_v46 = vpack.c.bf16 %v141_v38, %v140_v37  ;;  %v30_v47 = vmul.f32 %v29_v41, %v28_v40 }
   0xb   :  { %364 = vmatprep.subr.bf16.mxu1 %v385_v0  ;;  %v34_v48 = vmul.f32 %v33_v43, %v32_v42  ;;  %v142_v49 = vld [vmem:[%s562_s5 + $0x60] sm:$0xff]  ;;  %v143_v50 = vld [vmem:[%s562_s5 + $0x68] sm:$0xff]  ;;  %v356_v51 = vpack.c.bf16 %v51_v45, %v50_v44  ;;  %v144_v54 = vld [vmem:[%s562_s5 + $0x70] sm:$0xff] }
   0xc   :  { %342 = vmatpush3.bf16.msra.mxu0 %v341_v13  ;;  %v377_v52 = vpack.c.bf16 %v143_v50, %v142_v49  ;;  %v145_v55 = vld [vmem:[%s562_s5 + $0x78] sm:$0xff]  ;;  %v228_v57 = vld [vmem:[%s566_s4] ss:$0 sm:$0xff] }
   0xd   :  { %343 = vmatprep.subr.bf16.mxu0 %v385_v0  ;;  %v35_v53 = vadd.f32 %v34_v48, %v30_v47  ;;  %v380_v56 = vpack.c.bf16 %v145_v55, %v144_v54  ;;  %v229_v62 = vld [vmem:[%s567_s6] ss:$0 sm:$0xff] }
   0xe   :  { %366 = vmatpush3.bf16.msra.mxu1 %v365_v24 }
   0xf   :  { %367 = vmatprep.subr.bf16.mxu1 %v385_v0 }
  0x10   :  { %345 = vmatpush3.bf16.msra.mxu0 %v344_v21 }
  0x11   :  { %346 = vmatprep.subr.bf16.mxu0 %v385_v0 }
  0x12   :  { %369 = vmatpush3.bf16.msra.mxu1 %v368_v30 }
  0x13   :  { %370 = vmatprep.subr.bf16.mxu1 %v385_v0 }
  0x14   :  { %348 = vmatpush3.bf16.msra.mxu0 %v347_v27 }
  0x15   :  { %349 = vmatprep.subr.bf16.mxu0 %v385_v0 }
  0x16   :  { %372 = vmatpush3.bf16.msra.mxu1 %v371_v36 }
  0x17   :  { %373 = vmatprep.subr.bf16.mxu1 %v385_v0 }
  0x18   :  { %351 = vmatpush3.bf16.msra.mxu0 %v350_v33 }
  0x19   :  { %352 = vmatprep.subr.bf16.mxu0 %v385_v0 }
  0x1a   :  { %375 = vmatpush3.bf16.msra.mxu1 %v374_v46 }
  0x1b   :  { %376 = vmatprep.subr.bf16.mxu1 %v385_v0 }
  0x1c   :  { %354 = vmatpush3.bf16.msra.mxu0 %v353_v39 }
  0x1d   :  { %355 = vmatprep.subr.bf16.mxu0 %v385_v0 }
  0x1e   :  { %378 = vmatpush3.bf16.msra.mxu1 %v377_v52 }
  0x1f   :  { %379 = vmatprep.subr.bf16.mxu1 %v385_v0 }
  0x20   :  { %357 = vmatpush3.bf16.msra.mxu0 %v356_v51 }
  0x22   :  { %381 = vmatpush3.bf16.msra.mxu1 %v380_v56 }
  0x23   :  { %297 = vmatmul.mubr.f32.vlgmr.msra.gmra.mrb[0].mxu0 %v35_v53 }
  0xf6   :  { %v125_v58 = vpop.f32.mrb[0].mxu0 }
  0xf7   :  { %v126_v59 = vadd.f32 %v228_v57, %v125_v58  ;;  %v298_v60 = vpop.f32.mrb[1].mxu0 }
  0xf9   :  { %v129_v61 = vmax.f32 %v126_v59, 0.0 }
  0xfb   :  { %332 = vmatmul.mubr.f32.vlgmr.msra.gmra.mrb[0].mxu1 %v129_v61 }
 0x1ce   :  { %v219_v63 = vpop.f32.mrb[0].mxu1 }
 0x1cf   :  { %v220_v0 = vadd.f32 %v229_v62, %v219_v63  ;;  %v333_v1 = vpop.f32.mrb[1].mxu1 }
 0x1d1   :  { %223 = vst [vmem:[%s568_s7] sm:$0xff] %v220_v0 }

// kernel: _train_forward.5
= control target key start
LH: loop header
LB: loop body
LE: loop exit
PB: predicated region body
PF: predicated region fallthrough
CT: control target
= control target key end

     0   :  { %v29_v0 = vlaneseq  ;;  %v157_v2 = vmov 0   ;;  %s223_s0 = inlined_call_operand.<no memory space> [shape: f32[1,1], index: 0, kind: input, shape index: {}]   ;;  %s224_s1 = inlined_call_operand.vmem [shape: f32[8,128], index: 1, kind: input, shape index: {}]   ;;  %s225_s2 = inlined_call_operand.vmem [shape: s32[8,1], index: 2, kind: input, shape index: {}]   ;;  %s226_s3 = inlined_call_operand.vmem [shape: s32[8,1], index: 3, kind: input, shape index: {}]   ;;  %s227_s4 = inlined_call_operand.vmem [shape: f32[1,128], index: 4, kind: input, shape index: {}]   ;;  %s228_s5 = inlined_call_operand.hbm [shape: f32[1,1], index: 5, kind: output, shape index: {}]  }
   0x1   :  { %v58_v1 = vld [vmem:[%s226_s3] sm:$0xff]  ;;  %139 = vset.pattern.permute.xlu0 %v157_v2  ;;  %140 = vset.pattern.permute.xlu1 %v157_v2 }
   0x2   :  { %11 = vsyncpa [#allocation5], 0  ;;  %v28_v3 = vld [vmem:[%s224_s1] sm:$0xff]  ;;  %v30_v4 = vand.u32 127, %v29_v0  ;;  %60 = vperm.xlu1 %140, %v58_v1   ;;  %v158_v12 = vmov 0.0   ;;  %v78_v21 = vstv %s223_s0  ;;  %vm97_vm3 = vcmask 7168  }
   0x3   :  { %v51_v6 = vld [vmem:[%s225_s2] sm:$0xff]  ;;  %s145_s30 = scalar_lea.hbm %s228_s5, 16 }
   0x4   :  { %vm31_vm0 = vcmp.lt.s32.totalorder %v30_v4, 10  ;;  %v133_v14 = vld [vmem:[%s227_s4] ss:$0 sm:$0xff]  ;;  %s81_s4 = ssub.f32 1.0, %s223_s0  ;;  %p146_p0 = scmp.ne.s32.totalorder %s228_s5, %s145_s30 }
   0x5   :  { %v32_v5 = vsel %vm31_vm0, %v28_v3, -1e+30  ;;  %p149_p1 = scmp.lt.u32.totalorder %s145_s30, %s228_s5 }
   0x6   :  { %33 = vmax.xlane.f32.xlu0 %v32_v5  ;;  %v83_v25 = vstv %s81_s4 }
   0x7   :  { %p151_p2 = pnand %p149_p1, %p146_p0 }
  0x1c   :  { %53 = vperm.xlu0 %139, %v51_v6  }
  0x81   :  { %v61_v11 = vpop.permute.xlu1 %60 }
  0x82   :  { %vm62_vm2 = vcmp.eq.s32.totalorder %v30_v4, %v61_v11 }
  0x83   :  { %v132_v18 = vsel %vm62_vm2, 1.0, %v158_v12 }
  0x84   :  { %v74_v19 = vmul.f32 %v133_v14, %v132_v18 }
  0x93   :  { %v34_v7 = vpop.xlane.xlu0 %33 }
  0x94   :  { %v35_v8 = vsub.f32 %v32_v5, %v34_v7 }
  0x96   :  { %v36_v9 = vmul.f32 1.442695, %v35_v8 }
  0x98   :  { %141 = vpow2.f32 %v36_v9 }
  0x9b   :  { %v54_v10 = vpop.permute.xlu0 %53 }
  0x9c   :  { %vm55_vm1 = vcmp.eq.s32.totalorder %v30_v4, %v54_v10 }
  0x9d   :  { %v131_v13 = vsel %vm55_vm1, 1.0, %v158_v12 }
  0x9e   :  { %v71_v17 = vmul.f32 %v133_v14, %v131_v13 }
  0xa2   :  { %v142_v15 = vpop.eup %141 }
  0xa3   :  { %v38_v16 = vsel %vm31_vm0, %v142_v15, 0.0 }
  0xa4   :  { %39 = vadd.xlane.f32.xlu1 %v38_v16 }
  0xa8   :  { %72 = vadd.xlane.f32.xlu1 %v71_v17 }
  0xac   :  { %75 = vadd.xlane.f32.xlu1 %v74_v19 }
 0x131   :  { %v40_v20 = vpop.xlane.xlu1 %39 }
 0x132   :  { %143 = vlog2.f32 %v40_v20 }
 0x135   :  { %v73_v22 = vpop.xlane.xlu1 %72 }
 0x136   :  { %v77_v23 = vsub.f32 1.0, %v73_v22  ;;  %v87_v24 = vmul.f32 %v78_v21, %v73_v22 }
 0x138   :  { %v79_v27 = vmul.f32 %v78_v21, %v77_v23 }
 0x139   :  { %v76_v26 = vpop.xlane.xlu1 %75 }
 0x13a   :  { %v82_v28 = vsub.f32 1.0, %v76_v26  ;;  %v88_v29 = vmul.f32 %v83_v25, %v76_v26  ;;  %v80_v34 = vmul.f32 %v131_v13, %v79_v27 }
 0x13c   :  { %v144_v30 = vpop.eup %143  ;;  %v84_v31 = vmul.f32 %v83_v25, %v82_v28  ;;  %v89_v32 = vadd.f32 %v88_v29, %v87_v24 }
 0x13d   :  { %v42_v33 = vmul.f32 0.6931472, %v144_v30 }
 0x13e   :  { %v85_v35 = vmul.f32 %v132_v18, %v84_v31 }
 0x13f   :  { %v43_v36 = vsub.f32 %v35_v8, %v42_v33 }
 0x140   :  { %v86_v37 = vadd.f32 %v85_v35, %v80_v34 }
 0x141   :  { %v44_v38 = vsel %vm31_vm0, %v43_v36, 0.0 }
 0x142   :  { %45 = vadd.xlane.f32.xlu0 %v44_v38  ;;  %v90_v39 = vmul.f32 %v86_v37, %v43_v36 }
 0x144   :  { %91 = vadd.xlane.f32.xlu1 %v90_v39 }
 0x1cf   :  { %v46_v40 = vpop.xlane.xlu0 %45 }
 0x1d0   :  { %v47_v41 = vsub.f32 0.0, %v46_v40 }
 0x1d1   :  { %v92_v42 = vpop.xlane.xlu1 %91 }
 0x1d2   :  { %v48_v43 = vmul.f32 0.1, %v47_v41  ;;  %v93_v45 = vsub.f32 0.0, %v92_v42 }
 0x1d4   :  { %v94_v44 = vmul.f32 %v89_v32, %v48_v43 }
 0x1d6   :  { %v95_v46 = vadd.f32 %v94_v44, %v93_v45 }
 0x1d8   :  { %v98_v47 = vsel %vm97_vm3, %v95_v46, 0.0 }
 0x1d9   :  { %99 = vadd.xlane.f32.xlu1 %v98_v47 }
 0x266   :  { %v100_v48 = vpop.xlane.xlu1 %99 }
 0x267   :  { %v101_v49 = vrot.slane %v100_v48, 4 }
 0x269   :  { %v102_v50 = vadd.f32 %v101_v49, %v100_v48 }
 0x26b   :  { %v103_v51 = vrot.slane %v102_v50, 2 }
 0x26d   :  { %v104_v52 = vadd.f32 %v103_v51, %v102_v50 }
 0x26f   :  { %v105_v53 = vrot.slane %v104_v52, 1 }
 0x271   :  { %v106_v54 = vadd.f32 %v105_v53, %v104_v52 }
 0x273   :  { %134 = vpush %v106_v54 }
 0x2a4   :  { %s135_s0 = spop %134 }
 0x2a5   :  { %s115_s27 = smul.f32 0.125, %s135_s0 }
 0x2a7   :  { %117 = sst [smem:[#allocation4]] %s115_s27 }
 0x2a8   :  { %154 = shalt.err (!%p151_p2)
}
 0x2a9   :  { %s159_s10 = smov [#allocation4]  }
 0x2aa   :  { %125 = dma.smem_to_hbm %s159_s10, 16, %s228_s5, [#allocation5]  }
 0x2ab   :  { %155 = dma.done.wait [#allocation5], 16  }
 0x2ac   :  { %156 = vsyncadd [#allocation5], 4294967280 }
 0x2ad   :  { %129 = sfence }
 0x2ae   :  { %130 = vsyncpa [#allocation5], 1 }

</bundles_post_ra>
